<compile_context>
chip_gen: v7x
topology: tpu7x:2x2x1
jax: 0.10.0
libtpu: 0.0.40
codegen_flags: <defaults>
</compile_context>

<pallas_src>
from functools import partial

import jax
import jax.numpy as jnp
from jax.experimental import pallas as pl
from jax.experimental.pallas import tpu as pltpu


def _drop_path_kernel(mask_ref, x_ref, o_ref):
    # mask_ref: (TILE_B, 1) pre-scaled keep mask (0 or 1/keep_prob) in x.dtype.
    # x_ref / o_ref: (TILE_B, TILE_F) VMEM tiles.  Row-broadcast multiply only;
    # boundary-block garbage never escapes because the boundary store is masked.
    o_ref[...] = x_ref[...] * mask_ref[...]


def _round_up(n, m):
    return ((n + m - 1) // m) * m


def _choose_tiles(B, feat, dtype):
    """Pick (TILE_B, TILE_F) obeying the (8,128)/full-dim rule with ragged grids."""
    itemsize = jnp.dtype(dtype).itemsize
    sub = max(8, 32 // itemsize)          # sublane tile: 8 f32, 16 bf16, 32 int8/fp8
    target = 4 * 1024 * 1024              # ~4 MiB per x tile -> ~16 MiB double-buffered
    row_bytes = feat * itemsize

    if row_bytes * sub <= target:
        # Full rows fit: keep TILE_F = feat (contiguous DMA, zero wasted lanes)
        # and grow TILE_B to reach the tile budget.
        tile_f = feat
        rows = max(sub, (target // max(row_bytes, 1)) // sub * sub)
        tile_b = min(rows, _round_up(B, sub))
        # Keep >= 4 batch blocks when B allows, so both TCs on v7x have work.
        if pl.cdiv(B, tile_b) < 4:
            tile_b = max(sub, min(tile_b, _round_up(pl.cdiv(B, 4), sub)))
    else:
        # Rows too long for one tile: tile the feature axis in 128-lane multiples.
        tile_b = sub
        tile_f = max(128, (target // (tile_b * itemsize)) // 128 * 128)
        tile_f = min(tile_f, _round_up(feat, 128))
    return tile_b, tile_f


@partial(jax.jit, static_argnames=("drop_prob", "scale_by_keep"))
def _drop_path_train(x, key, drop_prob, scale_by_keep):
    keep_prob = 1.0 - drop_prob
    B = x.shape[0]
    orig_shape = x.shape

    # Per-sample Bernoulli(keep_prob) mask, pre-scaled (O(B) work, fused under jit).
    mask = jax.random.bernoulli(key, p=keep_prob, shape=(B,))
    scale = (1.0 / keep_prob) if (keep_prob > 0.0 and scale_by_keep) else 1.0
    mask_scaled = (mask.astype(x.dtype) * jnp.asarray(scale, x.dtype)).reshape(B, 1)

    # Flatten trailing axes: batch -> sublane axis, features -> lane axis.
    feat = 1
    for d in orig_shape[1:]:
        feat *= d
    x2 = x.reshape(B, feat)

    tile_b, tile_f = _choose_tiles(B, feat, x.dtype)
    # Feature axis innermost: mask block index (i, 0) is constant across inner steps.
    grid = (pl.cdiv(B, tile_b), pl.cdiv(feat, tile_f))

    out = pl.pallas_call(
        _drop_path_kernel,
        out_shape=jax.ShapeDtypeStruct((B, feat), x.dtype),
        grid=grid,
        in_specs=[
            pl.BlockSpec((tile_b, 1), lambda i, j: (i, 0)),        # mask rows
            pl.BlockSpec((tile_b, tile_f), lambda i, j: (i, j)),   # x tile
        ],
        out_specs=pl.BlockSpec((tile_b, tile_f), lambda i, j: (i, j)),
        compiler_params=pltpu.CompilerParams(
            dimension_semantics=("parallel", "parallel"),
            vmem_limit_bytes=32 * 1024 * 1024,
        ),
    )(mask_scaled, x2)

    return out.reshape(orig_shape)


def drop_path(x, drop_prob: float = 0.0, training: bool = False,
              scale_by_keep: bool = True, *, key=None):
    """Matches mmcls/timm drop_path semantics: identity when drop_prob==0 or eval."""
    if drop_prob == 0.0 or not training:
        return x
    if key is None:
        raise ValueError(
            "drop_path(training=True, drop_prob>0) requires an explicit PRNG `key`.")
    return _drop_path_train(x, key, float(drop_prob), bool(scale_by_keep))


class DropPath:
    """Drop paths (Stochastic Depth) per sample."""

    def __init__(self, drop_prob=None):
        self.drop_prob = drop_prob
        self.training = True  # mimic nn.Module training flag

    def __call__(self, x, *, key=None):
        return drop_path(x, self.drop_prob, self.training, key=key)

    def extra_repr(self) -> str:
        return "p={}".format(self.drop_prob)


if __name__ == "__main__":
    root = jax.random.PRNGKey(0)
    kx, kmask, kx2, kmask2 = jax.random.split(root, 4)

    # Small MAE-ViT-like token tensor.
    B, N, D = 2, 8, 32
    x = jax.random.normal(kx, (B, N, D), dtype=jnp.float32)

    layer = DropPath(drop_prob=0.25)
    y = jax.block_until_ready(layer(x, key=kmask))

    # Pure-JAX reference using the identical key -> identical per-sample mask.
    keep_prob = 1.0 - 0.25
    mask_ref = jax.random.bernoulli(kmask, p=keep_prob, shape=(B,)).astype(jnp.float32)
    y_ref = x * (mask_ref / keep_prob)[:, None, None]
    assert y.shape == x.shape and y.dtype == x.dtype
    assert jnp.allclose(y, y_ref, atol=1e-6, rtol=1e-6)

    # Ragged shape (B and feat not multiples of 8/128) exercises boundary blocks.
    B2, C2, L2 = 5, 3, 100
    x2 = jax.random.normal(kx2, (B2, C2, L2), dtype=jnp.float32)
    y2 = jax.block_until_ready(drop_path(x2, 0.25, True, key=kmask2))
    mask_ref2 = jax.random.bernoulli(kmask2, p=keep_prob, shape=(B2,)).astype(jnp.float32)
    y2_ref = x2 * (mask_ref2 / keep_prob)[:, None, None]
    assert jnp.allclose(y2, y2_ref, atol=1e-6, rtol=1e-6)

    # eval-mode / drop_prob==0 short-circuit returns x unchanged.
    layer.training = False
    y_eval = jax.block_until_ready(layer(x))
    assert jnp.allclose(y_eval, x)

    print("KERNEL_OK")
</pallas_src>

<mosaic_0001>
module attributes {stable_mosaic.version = 11 : i64} {
  func.func @_drop_path_kernel(%arg0: i32, %arg1: i32, %arg2: memref<8x1xf32, #tpu.memory_space<vmem>>, %arg3: memref<8x256xf32, #tpu.memory_space<vmem>>, %arg4: memref<8x256xf32, #tpu.memory_space<vmem>>) attributes {dimension_semantics = [#tpu.dimension_semantics<parallel>, #tpu.dimension_semantics<parallel>], iteration_bounds = array<i64: 1, 1>, scalar_prefetch = 0 : i64, scratch_operands = 0 : i64, tpu.core_type = #tpu.core_type<tc>, window_params = [{transform_indices = @transform_0, window_bounds = array<i64: 8, 1>}, {transform_indices = @transform_1, window_bounds = array<i64: 8, 256>}, {transform_indices = @transform_2, window_bounds = array<i64: 8, 256>}]} {
    %c0 = arith.constant 0 : index
    %c0_0 = arith.constant 0 : index
    %0 = vector.load %arg3[%c0, %c0_0] : memref<8x256xf32, #tpu.memory_space<vmem>>, vector<8x256xf32>
    %c0_1 = arith.constant 0 : index
    %c0_2 = arith.constant 0 : index
    %1 = vector.load %arg2[%c0_1, %c0_2] : memref<8x1xf32, #tpu.memory_space<vmem>>, vector<8x1xf32>
    %2 = vector.broadcast %1 : vector<8x1xf32> to vector<8x256xf32>
    %3 = arith.mulf %0, %2 : vector<8x256xf32>
    %c0_3 = arith.constant 0 : index
    %c0_4 = arith.constant 0 : index
    %4 = vector.load %arg4[%c0_3, %c0_4] : memref<8x256xf32, #tpu.memory_space<vmem>>, vector<8x256xf32>
    tpu.vector_store %arg4[%c0_3, %c0_4], %3 {strides = array<i32>} : memref<8x256xf32, #tpu.memory_space<vmem>>, vector<8x256xf32>,
    return
  }
  func.func @transform_0(%arg0: i32, %arg1: i32) -> (i32, i32) {
    %c0_i32 = arith.constant 0 : i32
    %c0_i32_0 = arith.constant 0 : i32
    return %arg0, %c0_i32 : i32, i32
  }
  func.func @transform_1(%arg0: i32, %arg1: i32) -> (i32, i32) {
    %c0_i32 = arith.constant 0 : i32
    return %arg0, %arg1 : i32, i32
  }
  func.func @transform_2(%arg0: i32, %arg1: i32) -> (i32, i32) {
    %c0_i32 = arith.constant 0 : i32
    return %arg0, %arg1 : i32, i32
  }
}

</mosaic_0001>

<bundles_post_ra>
// kernel: _drop_path_train.1
= control target key start
LH: loop header
LB: loop body
LE: loop exit
PB: predicated region body
PF: predicated region fallthrough
CT: control target
= control target key end

     0   :  { %v105_v1 = vmov 0   ;;  %v23_v2 = vlaneseq  ;;  %v106_v3 = vmov 269488144   ;;  %s131_s0 = inlined_call_operand.vmem [shape: f32[2,1], index: 0, kind: input, shape index: {}]   ;;  %s132_s1 = inlined_call_operand.vmem [shape: f32[2,256], index: 1, kind: input, shape index: {}]   ;;  %s133_s2 = inlined_call_operand.vmem [shape: f32[2,256], index: 2, kind: output, shape index: {}]  }
   0x1   :  { %v15_v0 = vld [vmem:[%s131_s0] sm:$0xff]  ;;  %104 = vset.pattern.permute.xlu0 %v105_v1  ;;  %v21_v4 = vunpack.c.l.s4 %v106_v3 }
   0x2   :  { %18 = vperm.xlu0 %104, %v15_v0   ;;  %v24_v5 = vshrl.u32 %v23_v2, 7  ;;  %v11_v8 = vld [vmem:[%s132_s1] sm:$0xf] }
   0x3   :  { %v22_v6 = vunpack.c.0.s8 %v21_v4 }
   0x5   :  { %v25_v7 = vsub.s32 %v22_v6, %v24_v5 }
  0x81   :  { %v19_v9 = vpop.permute.xlu0 %18 }
  0x82   :  { %v26_v10 = vrot.slane %v19_v9, %v25_v7 }
  0x84   :  { %v52_v11 = vmul.f32 %v26_v10, %v11_v8 }
  0x86   :  { %56 = vst [vmem:[#allocation2] sm:$0xf] %v52_v11 }
  0x8d   :  { %v77_v12 = vld [vmem:[#allocation2] sm:$0xf] }
  0x8e   :  { %78 = vst [vmem:[%s133_s2] sm:$0xf] %v77_v12 }

</bundles_post_ra>
